<compile_context>
chip_gen: v5e
topology: v5e:2x2
jax: 0.10.0
libtpu: 0.0.40
codegen_flags: <defaults>
</compile_context>

<pallas_src>
import math
import functools

import jax
import jax.numpy as jnp
from jax import lax
from jax.experimental import pallas as pl
from jax.experimental.pallas import tpu as pltpu

NEG_INF = -1e30            # large negative instead of -inf (no NaN post-softmax)


def _default_vmem_limit():
    # ~75% of physical per-core VMEM: ~48 MiB on v7x (64 MiB physical), 96 MiB on
    # v5e/v6e (128 MiB physical). Falls back to a v7x-safe 48 MiB.
    try:
        phys = int(pltpu.get_tpu_info().vmem_capacity_bytes)
        return max(32 * 1024 * 1024, min(96 * 1024 * 1024, (phys * 3) // 4))
    except Exception:
        return 48 * 1024 * 1024


_VMEM_LIMIT = _default_vmem_limit()


def _row_tile(n, pref=512):
    """Largest row tile from a preferred ladder that evenly divides n (keeps BlockSpecs
    aligned to the (8,128) rule: tile % 8 == 0 or tile == n). 512 preferred for v5e/v6e
    HBM roofline; small demo shapes just get n."""
    for t in (pref, 256, 128, 64, 32, 16, 8):
        if n % t == 0:
            return t
    return n


def _col_tile(n, pref=1024):
    """Vocab (lane) tile: multiple of 128 when possible, else the full dimension."""
    for t in (pref, 512, 256, 128):
        if n % t == 0:
            return t
    return n


def _batch_tile(B, S, target=256):
    """Smallest divisor Bt of B with Bt*S >= target rows per attention grid step
    (fills MXU rows / amortizes per-step overhead); falls back to the whole batch."""
    for bt in range(1, B + 1):
        if B % bt == 0 and bt * S >= target:
            return bt
    return B


def _cparams(*sem):
    return pltpu.CompilerParams(dimension_semantics=tuple(sem),
                                vmem_limit_bytes=_VMEM_LIMIT)


def _layer_norm(x, g, b, eps=1e-5):
    # f32 statistics (kept in f32 even when matmul operands are bf16).
    mu = jnp.mean(x, axis=-1, keepdims=True)
    var = jnp.mean((x - mu) ** 2, axis=-1, keepdims=True)
    return (x - mu) * lax.rsqrt(var + eps) * g + b


# ----------------------------------------------------------------------------
# Kernel 1: fused self-attention block = QKV proj + causal MHA + out-projection.
# Grid over batch blocks (Bt batch elements per step). Weights are grid-invariant.
# Output is SA(x) (post out-proj, pre residual/LN), stored bf16.
# ----------------------------------------------------------------------------
def sa_block_kernel(x_ref, pad_ref, wqkv_ref, bqkv_ref, wo_ref, bo_ref, o_ref,
                    *, nhead, d_model):
    Bt, S, D = x_ref.shape
    dh = d_model // nhead
    scale = 1.0 / math.sqrt(dh)

    # Fused QKV projection on the whole (Bt*S, D) row slab (bf16 MXU, f32 accumulate).
    x2 = x_ref[...].reshape(Bt * S, D).astype(jnp.bfloat16)
    qkv = (jnp.dot(x2, wqkv_ref[...], preferred_element_type=jnp.float32)
           + bqkv_ref[...])                                       # (Bt*S, 3D) f32

    # Causal + key-padding mask built in-kernel with a single where (no -2e30 sums).
    rows = lax.broadcasted_iota(jnp.int32, (1, S, S), 1)
    cols = lax.broadcasted_iota(jnp.int32, (1, S, S), 2)
    allowed = (cols <= rows) & (pad_ref[...] == 0.0)              # (Bt, S, S) bool
    bias = jnp.where(allowed, 0.0, NEG_INF)                       # (Bt, S, S) f32

    # Out-projection accumulated per head: concat(heads) @ Wo == sum_h ctx_h @ Wo[h-slice]
    # -> no concatenated head tensor, no relayout, bounded vreg pressure.
    sa = jnp.zeros((Bt * S, D), jnp.float32) + bo_ref[...]        # broadcast bo once
    # TODO(synk): replace the full (S,S) score tile with a flash-style KV-tiled
    # online-softmax loop before scaling S to real sequence lengths.
    for h in range(nhead):                                        # static head slices
        q_h = qkv[:, 0 * D + h * dh: 0 * D + (h + 1) * dh]
        k_h = qkv[:, 1 * D + h * dh: 1 * D + (h + 1) * dh]
        v_h = qkv[:, 2 * D + h * dh: 2 * D + (h + 1) * dh]
        qh = q_h.reshape(Bt, S, dh).astype(jnp.bfloat16)
        kh = k_h.reshape(Bt, S, dh).astype(jnp.bfloat16)
        vh = v_h.reshape(Bt, S, dh).astype(jnp.bfloat16)

        s = jnp.einsum('bqd,bkd->bqk', qh, kh,
                       preferred_element_type=jnp.float32) * scale + bias
        m = jnp.max(s, axis=-1, keepdims=True)                    # softmax stays f32
        e = jnp.exp(s - m)
        # approx reciprocal (EUP): ~1e-3 relative error on probabilities, inference-OK.
        p = e * pl.reciprocal(jnp.sum(e, axis=-1, keepdims=True), approx=True)
        ctx = jnp.einsum('bqk,bkd->bqd', p.astype(jnp.bfloat16), vh,
                         preferred_element_type=jnp.float32)      # (Bt, S, dh)
        sa = sa + jnp.dot(ctx.reshape(Bt * S, dh).astype(jnp.bfloat16),
                          wo_ref[h * dh:(h + 1) * dh, :],
                          preferred_element_type=jnp.float32)

    o_ref[...] = sa.reshape(Bt, S, D).astype(o_ref.dtype)         # bf16 HBM writeback


def sa_block_pallas(x, pad, wqkv, bqkv, wo, bo, nhead):
    B, S, D = x.shape
    bt = _batch_tile(B, S)
    const = lambda b: (0, 0)
    return pl.pallas_call(
        functools.partial(sa_block_kernel, nhead=nhead, d_model=D),
        out_shape=jax.ShapeDtypeStruct((B, S, D), jnp.bfloat16),
        grid_spec=pltpu.PrefetchScalarGridSpec(
            num_scalar_prefetch=0,
            grid=(B // bt,),
            in_specs=[
                pl.BlockSpec((bt, S, D), lambda b: (b, 0, 0)),    # activations
                pl.BlockSpec((bt, 1, S), lambda b: (b, 0, 0)),    # padding row (1=pad)
                pl.BlockSpec((D, 3 * D), const),                  # Wqkv (grid-invariant)
                pl.BlockSpec((1, 3 * D), const),                  # bqkv
                pl.BlockSpec((D, D), const),                      # Wo
                pl.BlockSpec((1, D), const),                      # bo
            ],
            out_specs=pl.BlockSpec((bt, S, D), lambda b: (b, 0, 0)),
        ),
        compiler_params=_cparams("parallel"),   # batch axis shards across v7x TCs
    )(x, pad, wqkv, bqkv, wo, bo)


# ----------------------------------------------------------------------------
# Kernel 2: residual + LN1 + FFN + residual + LN2 (+ keep-mask epilogue), row-tiled
# over the flattened (B*S, D) residual stream. Residual stream stays f32.
# ----------------------------------------------------------------------------
def post_attn_kernel(x_ref, sa_ref, keep_ref, w1_ref, b1_ref, w2_ref, b2_ref,
                     g1_ref, be1_ref, g2_ref, be2_ref, o_ref):
    x1 = _layer_norm(x_ref[...] + sa_ref[...].astype(jnp.float32),
                     g1_ref[...], be1_ref[...])                    # f32 LN
    h = jnp.maximum(jnp.dot(x1.astype(jnp.bfloat16), w1_ref[...],
                            preferred_element_type=jnp.float32) + b1_ref[...], 0.0)
    ff = jnp.dot(h.astype(jnp.bfloat16), w2_ref[...],
                 preferred_element_type=jnp.float32) + b2_ref[...]
    # keep_ref is all-ones except after the final layer (generating=False path),
    # so the decoder-output masking happens once here instead of per vocab tile.
    o_ref[...] = _layer_norm(x1 + ff, g2_ref[...], be2_ref[...]) * keep_ref[...]


def post_attn_pallas(x, sa, keep, lp):
    R, D = x.shape
    F = lp["w1"].shape[1]
    tm = _row_tile(R)
    row = lambda i: (i, 0)
    const = lambda i: (0, 0)
    # TODO(synk): at production D/F, tile the FFN hidden dim F with an extra "arbitrary"
    # grid axis and single-buffer the weight blocks to fit v7x's 64 MiB VMEM.
    return pl.pallas_call(
        post_attn_kernel,
        out_shape=jax.ShapeDtypeStruct((R, D), jnp.float32),
        grid_spec=pltpu.PrefetchScalarGridSpec(
            num_scalar_prefetch=0,
            grid=(R // tm,),
            in_specs=[
                pl.BlockSpec((tm, D), row),                                # x (residual)
                pl.BlockSpec((tm, D), row),                                # SA(x) bf16
                pl.BlockSpec((tm, 1), row),                                # keep mask
                pl.BlockSpec((D, F), const), pl.BlockSpec((1, F), const),  # W1, b1
                pl.BlockSpec((F, D), const), pl.BlockSpec((1, D), const),  # W2, b2
                pl.BlockSpec((1, D), const), pl.BlockSpec((1, D), const),  # g1, be1
                pl.BlockSpec((1, D), const), pl.BlockSpec((1, D), const),  # g2, be2
            ],
            out_specs=pl.BlockSpec((tm, D), row),
        ),
        compiler_params=_cparams("parallel"),
    )(x, sa, keep, lp["w1"], lp["b1"], lp["w2"], lp["b2"],
      lp["g1"], lp["be1"], lp["g2"], lp["be2"])


# ----------------------------------------------------------------------------
# Kernel 3: vocab projection, tiled over rows and vocab (lane-dense output tiles;
# weight DMA overlaps the MXU across the vocab axis).
# ----------------------------------------------------------------------------
def fc_out_kernel(x_ref, w_ref, b_ref, o_ref):
    o_ref[...] = jnp.dot(x_ref[...].astype(jnp.bfloat16), w_ref[...],
                         preferred_element_type=jnp.float32) + b_ref[...]


def fc_out_pallas(x, w, b):
    R, D = x.shape
    V = w.shape[1]
    tm = _row_tile(R)
    tv = _col_tile(V)
    return pl.pallas_call(
        fc_out_kernel,
        out_shape=jax.ShapeDtypeStruct((R, V), jnp.float32),
        grid_spec=pltpu.PrefetchScalarGridSpec(
            num_scalar_prefetch=0,
            grid=(R // tm, V // tv),
            in_specs=[
                pl.BlockSpec((tm, D), lambda i, j: (i, 0)),   # resident across j
                pl.BlockSpec((D, tv), lambda i, j: (0, j)),
                pl.BlockSpec((1, tv), lambda i, j: (0, j)),
            ],
            out_specs=pl.BlockSpec((tm, tv), lambda i, j: (i, j)),
        ),
        compiler_params=_cparams("parallel", "parallel"),
    )(x, w, b)


# ----------------------------------------------------------------------------
# Parameter construction (deterministic, synthetic) + full forward (glue)
# ----------------------------------------------------------------------------
def init_params(key, vocab_size, d_model, nhead, num_layers, padding_idx,
                dim_feedforward, max_len=64):
    keys = jax.random.split(key, 2 + num_layers)

    embed = 0.02 * jax.random.normal(keys[0], (vocab_size, d_model), jnp.float32)
    embed = embed.at[padding_idx].set(0.0)     # nn.Embedding(padding_idx=...) zero row

    # PositionalEncoding table (sin/cos), shape (max_len, d_model)
    pos = jnp.arange(max_len, dtype=jnp.float32)[:, None]
    div = jnp.exp(jnp.arange(0, d_model, 2, dtype=jnp.float32)
                  * (-math.log(10000.0) / d_model))
    pe = jnp.zeros((max_len, d_model), jnp.float32)
    pe = pe.at[:, 0::2].set(jnp.sin(pos * div))
    pe = pe.at[:, 1::2].set(jnp.cos(pos * div))

    def w(k, shape, dtype=jnp.bfloat16):
        # Weight matrices stored bf16 (MXU-friendly, half the DMA); biases/LN in f32.
        return (0.02 * jax.random.normal(k, shape, jnp.float32)).astype(dtype)

    layers = []
    for i in range(num_layers):
        lk = jax.random.split(keys[2 + i], 8)
        layers.append(dict(
            wqkv=w(lk[0], (d_model, 3 * d_model)),
            bqkv=w(lk[1], (1, 3 * d_model), jnp.float32),
            wo=w(lk[2], (d_model, d_model)), bo=w(lk[3], (1, d_model), jnp.float32),
            w1=w(lk[4], (d_model, dim_feedforward)),
            b1=w(lk[5], (1, dim_feedforward), jnp.float32),
            w2=w(lk[6], (dim_feedforward, d_model)),
            b2=w(lk[7], (1, d_model), jnp.float32),
            g1=jnp.ones((1, d_model), jnp.float32),
            be1=jnp.zeros((1, d_model), jnp.float32),
            g2=jnp.ones((1, d_model), jnp.float32),
            be2=jnp.zeros((1, d_model), jnp.float32),
        ))

    fc_w = (0.02 * jax.random.normal(keys[1], (d_model, vocab_size), jnp.float32)
            ).astype(jnp.bfloat16)
    fc_b = jnp.zeros((1, vocab_size), jnp.float32)
    return dict(embed=embed, pe=pe, layers=layers, fc_w=fc_w, fc_b=fc_b)


def transformer_decoder_only_forward(params, tgt, tgt_key_padding_mask, nhead,
                                     generating=False):
    B, S = tgt.shape
    D = params["embed"].shape[1]
    R = B * S

    # Embedding gather (plain-JAX glue).
    x = jnp.take(params["embed"], tgt, axis=0)                        # (B, S, D)
    # Faithful reproduction of PositionalEncoding applied to a batch-first tensor:
    # pe[:x.size(0)] indexes the *batch* dim and broadcasts over the sequence dim.
    x = x + params["pe"][:B][:, None, :]                              # (B, S, D)

    # Per-batch key-padding row (1.0 where padding); (B,S,S) bias built in-kernel.
    pad = tgt_key_padding_mask.astype(jnp.float32)[:, None, :]        # (B, 1, S)

    ones = jnp.ones((R, 1), jnp.float32)
    if generating:
        keep_last = ones
    else:
        keep_last = (~tgt_key_padding_mask).astype(jnp.float32).reshape(R, 1)

    xf = x.reshape(R, D)                                              # f32 residual stream
    n_layers = len(params["layers"])
    for li, lp in enumerate(params["layers"]):
        sa = sa_block_pallas(xf.reshape(B, S, D), pad,
                             lp["wqkv"], lp["bqkv"], lp["wo"], lp["bo"], nhead)
        keep = keep_last if li == n_layers - 1 else ones
        xf = post_attn_pallas(xf, sa.reshape(R, D), keep, lp)         # (R, D) f32

    logits = fc_out_pallas(xf, params["fc_w"], params["fc_b"])        # (R, V) f32
    return logits.reshape(B, S, -1)


if __name__ == "__main__":
    # Small, deterministic config
    vocab_size = 64
    d_model = 32
    n_head = 4
    num_decoder_layers = 2
    padding_idx = 0
    dim_feedforward = 64
    B, S = 2, 8

    key = jax.random.PRNGKey(0)
    pkey, tkey = jax.random.split(key)
    params = init_params(pkey, vocab_size, d_model, n_head, num_decoder_layers,
                         padding_idx, dim_feedforward)

    # tokens in [2, vocab), trailing padding on batch element 1
    tgt = jax.random.randint(tkey, (B, S), 2, vocab_size, dtype=jnp.int32)
    tgt = tgt.at[1, S - 2:].set(padding_idx)
    tgt_key_padding_mask = (tgt == padding_idx)   # True where padding

    out = transformer_decoder_only_forward(params, tgt, tgt_key_padding_mask, n_head)
    out = jax.block_until_ready(out)
    assert out.shape == (B, S, vocab_size)
    assert bool(jnp.all(jnp.isfinite(out)))
    # TODO(synk): dropout layers are identity (eval mode); multinomial sampling of
    # generate_batch is host-side control flow and not part of the forward kernel.
    print("KERNEL_OK")
</pallas_src>

<mosaic_0001>
module attributes {stable_mosaic.version = 11 : i64} {
  func.func @sa_block_kernel(%arg0: i32, %arg1: memref<2x8x32xf32, #tpu.memory_space<vmem>>, %arg2: memref<2x1x8xf32, #tpu.memory_space<vmem>>, %arg3: memref<32x96xbf16, #tpu.memory_space<vmem>>, %arg4: memref<1x96xf32, #tpu.memory_space<vmem>>, %arg5: memref<32x32xbf16, #tpu.memory_space<vmem>>, %arg6: memref<1x32xf32, #tpu.memory_space<vmem>>, %arg7: memref<2x8x32xbf16, #tpu.memory_space<vmem>>) attributes {dimension_semantics = [#tpu.dimension_semantics<parallel>], iteration_bounds = array<i64: 1>, scalar_prefetch = 0 : i64, scratch_operands = 0 : i64, tpu.core_type = #tpu.core_type<tc>, window_params = [{transform_indices = @transform_0, window_bounds = array<i64: 2, 8, 32>}, {transform_indices = @transform_1, window_bounds = array<i64: 2, 1, 8>}, {pipeline_mode = #tpu.pipeline_mode<synchronous>, transform_indices = @transform_2, window_bounds = array<i64: 32, 96>}, {pipeline_mode = #tpu.pipeline_mode<synchronous>, transform_indices = @transform_3, window_bounds = array<i64: 1, 96>}, {pipeline_mode = #tpu.pipeline_mode<synchronous>, transform_indices = @transform_4, window_bounds = array<i64: 32, 32>}, {pipeline_mode = #tpu.pipeline_mode<synchronous>, transform_indices = @transform_5, window_bounds = array<i64: 1, 32>}, {transform_indices = @transform_6, window_bounds = array<i64: 2, 8, 32>}]} {
    %c0 = arith.constant 0 : index
    %c0_0 = arith.constant 0 : index
    %c0_1 = arith.constant 0 : index
    %0 = vector.load %arg1[%c0, %c0_0, %c0_1] : memref<2x8x32xf32, #tpu.memory_space<vmem>>, vector<2x8x32xf32>
    %1 = vector.shape_cast %0 : vector<2x8x32xf32> to vector<16x32xf32>
    %2 = arith.truncf %1 : vector<16x32xf32> to vector<16x32xbf16>
    %c0_2 = arith.constant 0 : index
    %c0_3 = arith.constant 0 : index
    %3 = vector.load %arg3[%c0_2, %c0_3] : memref<32x96xbf16, #tpu.memory_space<vmem>>, vector<32x96xbf16>
    %cst = arith.constant dense<0.000000e+00> : vector<16x96xf32>
    %4 = tpu.matmul %2, %3, %cst {dimension_numbers = #tpu.dot_dimension_numbers<[1], [0], [0], [1], [0, 0, 1, 1], [], []>} : vector<16x32xbf16>, vector<32x96xbf16>, vector<16x96xf32> -> vector<16x96xf32>
    %c0_4 = arith.constant 0 : index
    %c0_5 = arith.constant 0 : index
    %5 = vector.load %arg4[%c0_4, %c0_5] : memref<1x96xf32, #tpu.memory_space<vmem>>, vector<1x96xf32>
    %6 = vector.broadcast %5 : vector<1x96xf32> to vector<16x96xf32>
    %7 = arith.addf %4, %6 : vector<16x96xf32>
    %8 = tpu.iota {dimensions = array<i32: 1>} : vector<1x8x8xi32>
    %9 = tpu.iota {dimensions = array<i32: 2>} : vector<1x8x8xi32>
    %10 = arith.cmpi sle, %9, %8 : vector<1x8x8xi32>
    %c0_6 = arith.constant 0 : index
    %c0_7 = arith.constant 0 : index
    %c0_8 = arith.constant 0 : index
    %11 = vector.load %arg2[%c0_6, %c0_7, %c0_8] : memref<2x1x8xf32, #tpu.memory_space<vmem>>, vector<2x1x8xf32>
    %cst_9 = arith.constant 0.000000e+00 : f32
    %12 = vector.broadcast %cst_9 : f32 to vector<2x1x8xf32>
    %13 = arith.cmpf oeq, %11, %12 : vector<2x1x8xf32>
    %14 = vector.broadcast %10 : vector<1x8x8xi1> to vector<2x8x8xi1>
    %15 = vector.broadcast %13 : vector<2x1x8xi1> to vector<2x8x8xi1>
    %16 = arith.andi %14, %15 : vector<2x8x8xi1>
    %cst_10 = arith.constant 0.000000e+00 : f32
    %cst_11 = arith.constant -1.000000e+30 : f32
    %17 = vector.broadcast %cst_10 : f32 to vector<2x8x8xf32>
    %18 = vector.broadcast %cst_11 : f32 to vector<2x8x8xf32>
    %19 = arith.select %16, %17, %18 : vector<2x8x8xi1>, vector<2x8x8xf32>
    %cst_12 = arith.constant 0.000000e+00 : f32
    %20 = vector.broadcast %cst_12 : f32 to vector<16x32xf32>
    %c0_13 = arith.constant 0 : index
    %c0_14 = arith.constant 0 : index
    %21 = vector.load %arg6[%c0_13, %c0_14] : memref<1x32xf32, #tpu.memory_space<vmem>>, vector<1x32xf32>
    %22 = vector.broadcast %21 : vector<1x32xf32> to vector<16x32xf32>
    %23 = arith.addf %20, %22 : vector<16x32xf32>
    %24 = vector.extract_strided_slice %7 {offsets = [0, 0], sizes = [16, 8], strides = [1, 1]} : vector<16x96xf32> to vector<16x8xf32>
    %25 = vector.extract_strided_slice %7 {offsets = [0, 32], sizes = [16, 8], strides = [1, 1]} : vector<16x96xf32> to vector<16x8xf32>
    %26 = vector.extract_strided_slice %7 {offsets = [0, 64], sizes = [16, 8], strides = [1, 1]} : vector<16x96xf32> to vector<16x8xf32>
    %27 = vector.shape_cast %24 : vector<16x8xf32> to vector<2x8x8xf32>
    %28 = arith.truncf %27 : vector<2x8x8xf32> to vector<2x8x8xbf16>
    %29 = vector.shape_cast %25 : vector<16x8xf32> to vector<2x8x8xf32>
    %30 = arith.truncf %29 : vector<2x8x8xf32> to vector<2x8x8xbf16>
    %31 = vector.shape_cast %26 : vector<16x8xf32> to vector<2x8x8xf32>
    %32 = arith.truncf %31 : vector<2x8x8xf32> to vector<2x8x8xbf16>
    "tpu.trace_start"() <{level = 10 : i32, message = "bqd,bkd->bqk"}> : () -> ()
    %cst_15 = arith.constant dense<0.000000e+00> : vector<2x8x8xf32>
    %33 = tpu.matmul %28, %30, %cst_15 {dimension_numbers = #tpu.dot_dimension_numbers<[2], [2], [1], [1], [0, 0, 0, 1, 1, 1], [0], [0]>} : vector<2x8x8xbf16>, vector<2x8x8xbf16>, vector<2x8x8xf32> -> vector<2x8x8xf32>
    "tpu.trace_stop"() : () -> ()
    %cst_16 = arith.constant 0.353553385 : f32
    %34 = vector.broadcast %cst_16 : f32 to vector<2x8x8xf32>
    %35 = arith.mulf %33, %34 : vector<2x8x8xf32>
    %36 = arith.addf %35, %19 : vector<2x8x8xf32>
    %cst_17 = arith.constant dense<0xFF800000> : vector<2x8xf32>
    %37 = vector.multi_reduction <maximumf>, %36, %cst_17 [2] : vector<2x8x8xf32> to vector<2x8xf32>
    %38 = vector.shape_cast %37 : vector<2x8xf32> to vector<2x8x1xf32>
    %39 = vector.broadcast %38 : vector<2x8x1xf32> to vector<2x8x8xf32>
    %40 = arith.subf %36, %39 : vector<2x8x8xf32>
    %41 = math.exp %40 : vector<2x8x8xf32>
    %cst_18 = arith.constant dense<0.000000e+00> : vector<2x8xf32>
    %42 = vector.multi_reduction <add>, %41, %cst_18 [2] : vector<2x8x8xf32> to vector<2x8xf32>
    %43 = vector.shape_cast %42 : vector<2x8xf32> to vector<2x8x1xf32>
    %44 = tpu.reciprocal %43 {approx = true} : vector<2x8x1xf32> -> vector<2x8x1xf32>
    %45 = vector.broadcast %44 : vector<2x8x1xf32> to vector<2x8x8xf32>
    %46 = arith.mulf %41, %45 : vector<2x8x8xf32>
    %47 = arith.truncf %46 : vector<2x8x8xf32> to vector<2x8x8xbf16>
    "tpu.trace_start"() <{level = 10 : i32, message = "bqk,bkd->bqd"}> : () -> ()
    %cst_19 = arith.constant dense<0.000000e+00> : vector<2x8x8xf32>
    %48 = tpu.matmul %47, %32, %cst_19 {dimension_numbers = #tpu.dot_dimension_numbers<[2], [1], [1], [2], [0, 0, 0, 1, 1, 2], [0], [0]>} : vector<2x8x8xbf16>, vector<2x8x8xbf16>, vector<2x8x8xf32> -> vector<2x8x8xf32>
    "tpu.trace_stop"() : () -> ()
    %49 = vector.shape_cast %48 : vector<2x8x8xf32> to vector<16x8xf32>
    %50 = arith.truncf %49 : vector<16x8xf32> to vector<16x8xbf16>
    %c0_20 = arith.constant 0 : index
    %c0_21 = arith.constant 0 : index
    %51 = vector.load %arg5[%c0_20, %c0_21] : memref<32x32xbf16, #tpu.memory_space<vmem>>, vector<8x32xbf16>
    %cst_22 = arith.constant dense<0.000000e+00> : vector<16x32xf32>
    %52 = tpu.matmul %50, %51, %cst_22 {dimension_numbers = #tpu.dot_dimension_numbers<[1], [0], [0], [1], [0, 0, 1, 1], [], []>} : vector<16x8xbf16>, vector<8x32xbf16>, vector<16x32xf32> -> vector<16x32xf32>
    %53 = arith.addf %23, %52 : vector<16x32xf32>
    %54 = vector.extract_strided_slice %7 {offsets = [0, 8], sizes = [16, 8], strides = [1, 1]} : vector<16x96xf32> to vector<16x8xf32>
    %55 = vector.extract_strided_slice %7 {offsets = [0, 40], sizes = [16, 8], strides = [1, 1]} : vector<16x96xf32> to vector<16x8xf32>
    %56 = vector.extract_strided_slice %7 {offsets = [0, 72], sizes = [16, 8], strides = [1, 1]} : vector<16x96xf32> to vector<16x8xf32>
    %57 = vector.shape_cast %54 : vector<16x8xf32> to vector<2x8x8xf32>
    %58 = arith.truncf %57 : vector<2x8x8xf32> to vector<2x8x8xbf16>
    %59 = vector.shape_cast %55 : vector<16x8xf32> to vector<2x8x8xf32>
    %60 = arith.truncf %59 : vector<2x8x8xf32> to vector<2x8x8xbf16>
    %61 = vector.shape_cast %56 : vector<16x8xf32> to vector<2x8x8xf32>
    %62 = arith.truncf %61 : vector<2x8x8xf32> to vector<2x8x8xbf16>
    "tpu.trace_start"() <{level = 10 : i32, message = "bqd,bkd->bqk"}> : () -> ()
    %cst_23 = arith.constant dense<0.000000e+00> : vector<2x8x8xf32>
    %63 = tpu.matmul %58, %60, %cst_23 {dimension_numbers = #tpu.dot_dimension_numbers<[2], [2], [1], [1], [0, 0, 0, 1, 1, 1], [0], [0]>} : vector<2x8x8xbf16>, vector<2x8x8xbf16>, vector<2x8x8xf32> -> vector<2x8x8xf32>
    "tpu.trace_stop"() : () -> ()
    %cst_24 = arith.constant 0.353553385 : f32
    %64 = vector.broadcast %cst_24 : f32 to vector<2x8x8xf32>
    %65 = arith.mulf %63, %64 : vector<2x8x8xf32>
    %66 = arith.addf %65, %19 : vector<2x8x8xf32>
    %cst_25 = arith.constant dense<0xFF800000> : vector<2x8xf32>
    %67 = vector.multi_reduction <maximumf>, %66, %cst_25 [2] : vector<2x8x8xf32> to vector<2x8xf32>
    %68 = vector.shape_cast %67 : vector<2x8xf32> to vector<2x8x1xf32>
    %69 = vector.broadcast %68 : vector<2x8x1xf32> to vector<2x8x8xf32>
    %70 = arith.subf %66, %69 : vector<2x8x8xf32>
    %71 = math.exp %70 : vector<2x8x8xf32>
    %cst_26 = arith.constant dense<0.000000e+00> : vector<2x8xf32>
    %72 = vector.multi_reduction <add>, %71, %cst_26 [2] : vector<2x8x8xf32> to vector<2x8xf32>
    %73 = vector.shape_cast %72 : vector<2x8xf32> to vector<2x8x1xf32>
    %74 = tpu.reciprocal %73 {approx = true} : vector<2x8x1xf32> -> vector<2x8x1xf32>
    %75 = vector.broadcast %74 : vector<2x8x1xf32> to vector<2x8x8xf32>
    %76 = arith.mulf %71, %75 : vector<2x8x8xf32>
    %77 = arith.truncf %76 : vector<2x8x8xf32> to vector<2x8x8xbf16>
    "tpu.trace_start"() <{level = 10 : i32, message = "bqk,bkd->bqd"}> : () -> ()
    %cst_27 = arith.constant dense<0.000000e+00> : vector<2x8x8xf32>
    %78 = tpu.matmul %77, %62, %cst_27 {dimension_numbers = #tpu.dot_dimension_numbers<[2], [1], [1], [2], [0, 0, 0, 1, 1, 2], [0], [0]>} : vector<2x8x8xbf16>, vector<2x8x8xbf16>, vector<2x8x8xf32> -> vector<2x8x8xf32>
    "tpu.trace_stop"() : () -> ()
    %79 = vector.shape_cast %78 : vector<2x8x8xf32> to vector<16x8xf32>
    %80 = arith.truncf %79 : vector<16x8xf32> to vector<16x8xbf16>
    %c8 = arith.constant 8 : index
    %c0_28 = arith.constant 0 : index
    %81 = vector.load %arg5[%c8, %c0_28] : memref<32x32xbf16, #tpu.memory_space<vmem>>, vector<8x32xbf16>
    %cst_29 = arith.constant dense<0.000000e+00> : vector<16x32xf32>
    %82 = tpu.matmul %80, %81, %cst_29 {dimension_numbers = #tpu.dot_dimension_numbers<[1], [0], [0], [1], [0, 0, 1, 1], [], []>} : vector<16x8xbf16>, vector<8x32xbf16>, vector<16x32xf32> -> vector<16x32xf32>
    %83 = arith.addf %53, %82 : vector<16x32xf32>
    %84 = vector.extract_strided_slice %7 {offsets = [0, 16], sizes = [16, 8], strides = [1, 1]} : vector<16x96xf32> to vector<16x8xf32>
    %85 = vector.extract_strided_slice %7 {offsets = [0, 48], sizes = [16, 8], strides = [1, 1]} : vector<16x96xf32> to vector<16x8xf32>
    %86 = vector.extract_strided_slice %7 {offsets = [0, 80], sizes = [16, 8], strides = [1, 1]} : vector<16x96xf32> to vector<16x8xf32>
    %87 = vector.shape_cast %84 : vector<16x8xf32> to vector<2x8x8xf32>
    %88 = arith.truncf %87 : vector<2x8x8xf32> to vector<2x8x8xbf16>
    %89 = vector.shape_cast %85 : vector<16x8xf32> to vector<2x8x8xf32>
    %90 = arith.truncf %89 : vector<2x8x8xf32> to vector<2x8x8xbf16>
    %91 = vector.shape_cast %86 : vector<16x8xf32> to vector<2x8x8xf32>
    %92 = arith.truncf %91 : vector<2x8x8xf32> to vector<2x8x8xbf16>
    "tpu.trace_start"() <{level = 10 : i32, message = "bqd,bkd->bqk"}> : () -> ()
    %cst_30 = arith.constant dense<0.000000e+00> : vector<2x8x8xf32>
    %93 = tpu.matmul %88, %90, %cst_30 {dimension_numbers = #tpu.dot_dimension_numbers<[2], [2], [1], [1], [0, 0, 0, 1, 1, 1], [0], [0]>} : vector<2x8x8xbf16>, vector<2x8x8xbf16>, vector<2x8x8xf32> -> vector<2x8x8xf32>
    "tpu.trace_stop"() : () -> ()
    %cst_31 = arith.constant 0.353553385 : f32
    %94 = vector.broadcast %cst_31 : f32 to vector<2x8x8xf32>
    %95 = arith.mulf %93, %94 : vector<2x8x8xf32>
    %96 = arith.addf %95, %19 : vector<2x8x8xf32>
    %cst_32 = arith.constant dense<0xFF800000> : vector<2x8xf32>
    %97 = vector.multi_reduction <maximumf>, %96, %cst_32 [2] : vector<2x8x8xf32> to vector<2x8xf32>
    %98 = vector.shape_cast %97 : vector<2x8xf32> to vector<2x8x1xf32>
    %99 = vector.broadcast %98 : vector<2x8x1xf32> to vector<2x8x8xf32>
    %100 = arith.subf %96, %99 : vector<2x8x8xf32>
    %101 = math.exp %100 : vector<2x8x8xf32>
    %cst_33 = arith.constant dense<0.000000e+00> : vector<2x8xf32>
    %102 = vector.multi_reduction <add>, %101, %cst_33 [2] : vector<2x8x8xf32> to vector<2x8xf32>
    %103 = vector.shape_cast %102 : vector<2x8xf32> to vector<2x8x1xf32>
    %104 = tpu.reciprocal %103 {approx = true} : vector<2x8x1xf32> -> vector<2x8x1xf32>
    %105 = vector.broadcast %104 : vector<2x8x1xf32> to vector<2x8x8xf32>
    %106 = arith.mulf %101, %105 : vector<2x8x8xf32>
    %107 = arith.truncf %106 : vector<2x8x8xf32> to vector<2x8x8xbf16>
    "tpu.trace_start"() <{level = 10 : i32, message = "bqk,bkd->bqd"}> : () -> ()
    %cst_34 = arith.constant dense<0.000000e+00> : vector<2x8x8xf32>
    %108 = tpu.matmul %107, %92, %cst_34 {dimension_numbers = #tpu.dot_dimension_numbers<[2], [1], [1], [2], [0, 0, 0, 1, 1, 2], [0], [0]>} : vector<2x8x8xbf16>, vector<2x8x8xbf16>, vector<2x8x8xf32> -> vector<2x8x8xf32>
    "tpu.trace_stop"() : () -> ()
    %109 = vector.shape_cast %108 : vector<2x8x8xf32> to vector<16x8xf32>
    %110 = arith.truncf %109 : vector<16x8xf32> to vector<16x8xbf16>
    %c16 = arith.constant 16 : index
    %c0_35 = arith.constant 0 : index
    %111 = vector.load %arg5[%c16, %c0_35] : memref<32x32xbf16, #tpu.memory_space<vmem>>, vector<8x32xbf16>
    %cst_36 = arith.constant dense<0.000000e+00> : vector<16x32xf32>
    %112 = tpu.matmul %110, %111, %cst_36 {dimension_numbers = #tpu.dot_dimension_numbers<[1], [0], [0], [1], [0, 0, 1, 1], [], []>} : vector<16x8xbf16>, vector<8x32xbf16>, vector<16x32xf32> -> vector<16x32xf32>
    %113 = arith.addf %83, %112 : vector<16x32xf32>
    %114 = vector.extract_strided_slice %7 {offsets = [0, 24], sizes = [16, 8], strides = [1, 1]} : vector<16x96xf32> to vector<16x8xf32>
    %115 = vector.extract_strided_slice %7 {offsets = [0, 56], sizes = [16, 8], strides = [1, 1]} : vector<16x96xf32> to vector<16x8xf32>
    %116 = vector.extract_strided_slice %7 {offsets = [0, 88], sizes = [16, 8], strides = [1, 1]} : vector<16x96xf32> to vector<16x8xf32>
    %117 = vector.shape_cast %114 : vector<16x8xf32> to vector<2x8x8xf32>
    %118 = arith.truncf %117 : vector<2x8x8xf32> to vector<2x8x8xbf16>
    %119 = vector.shape_cast %115 : vector<16x8xf32> to vector<2x8x8xf32>
    %120 = arith.truncf %119 : vector<2x8x8xf32> to vector<2x8x8xbf16>
    %121 = vector.shape_cast %116 : vector<16x8xf32> to vector<2x8x8xf32>
    %122 = arith.truncf %121 : vector<2x8x8xf32> to vector<2x8x8xbf16>
    "tpu.trace_start"() <{level = 10 : i32, message = "bqd,bkd->bqk"}> : () -> ()
    %cst_37 = arith.constant dense<0.000000e+00> : vector<2x8x8xf32>
    %123 = tpu.matmul %118, %120, %cst_37 {dimension_numbers = #tpu.dot_dimension_numbers<[2], [2], [1], [1], [0, 0, 0, 1, 1, 1], [0], [0]>} : vector<2x8x8xbf16>, vector<2x8x8xbf16>, vector<2x8x8xf32> -> vector<2x8x8xf32>
    "tpu.trace_stop"() : () -> ()
    %cst_38 = arith.constant 0.353553385 : f32
    %124 = vector.broadcast %cst_38 : f32 to vector<2x8x8xf32>
    %125 = arith.mulf %123, %124 : vector<2x8x8xf32>
    %126 = arith.addf %125, %19 : vector<2x8x8xf32>
    %cst_39 = arith.constant dense<0xFF800000> : vector<2x8xf32>
    %127 = vector.multi_reduction <maximumf>, %126, %cst_39 [2] : vector<2x8x8xf32> to vector<2x8xf32>
    %128 = vector.shape_cast %127 : vector<2x8xf32> to vector<2x8x1xf32>
    %129 = vector.broadcast %128 : vector<2x8x1xf32> to vector<2x8x8xf32>
    %130 = arith.subf %126, %129 : vector<2x8x8xf32>
    %131 = math.exp %130 : vector<2x8x8xf32>
    %cst_40 = arith.constant dense<0.000000e+00> : vector<2x8xf32>
    %132 = vector.multi_reduction <add>, %131, %cst_40 [2] : vector<2x8x8xf32> to vector<2x8xf32>
    %133 = vector.shape_cast %132 : vector<2x8xf32> to vector<2x8x1xf32>
    %134 = tpu.reciprocal %133 {approx = true} : vector<2x8x1xf32> -> vector<2x8x1xf32>
    %135 = vector.broadcast %134 : vector<2x8x1xf32> to vector<2x8x8xf32>
    %136 = arith.mulf %131, %135 : vector<2x8x8xf32>
    %137 = arith.truncf %136 : vector<2x8x8xf32> to vector<2x8x8xbf16>
    "tpu.trace_start"() <{level = 10 : i32, message = "bqk,bkd->bqd"}> : () -> ()
    %cst_41 = arith.constant dense<0.000000e+00> : vector<2x8x8xf32>
    %138 = tpu.matmul %137, %122, %cst_41 {dimension_numbers = #tpu.dot_dimension_numbers<[2], [1], [1], [2], [0, 0, 0, 1, 1, 2], [0], [0]>} : vector<2x8x8xbf16>, vector<2x8x8xbf16>, vector<2x8x8xf32> -> vector<2x8x8xf32>
    "tpu.trace_stop"() : () -> ()
    %139 = vector.shape_cast %138 : vector<2x8x8xf32> to vector<16x8xf32>
    %140 = arith.truncf %139 : vector<16x8xf32> to vector<16x8xbf16>
    %c24 = arith.constant 24 : index
    %c0_42 = arith.constant 0 : index
    %141 = vector.load %arg5[%c24, %c0_42] : memref<32x32xbf16, #tpu.memory_space<vmem>>, vector<8x32xbf16>
    %cst_43 = arith.constant dense<0.000000e+00> : vector<16x32xf32>
    %142 = tpu.matmul %140, %141, %cst_43 {dimension_numbers = #tpu.dot_dimension_numbers<[1], [0], [0], [1], [0, 0, 1, 1], [], []>} : vector<16x8xbf16>, vector<8x32xbf16>, vector<16x32xf32> -> vector<16x32xf32>
    %143 = arith.addf %113, %142 : vector<16x32xf32>
    %144 = vector.shape_cast %143 : vector<16x32xf32> to vector<2x8x32xf32>
    %145 = arith.truncf %144 : vector<2x8x32xf32> to vector<2x8x32xbf16>
    %c0_44 = arith.constant 0 : index
    %c0_45 = arith.constant 0 : index
    %c0_46 = arith.constant 0 : index
    %146 = vector.load %arg7[%c0_44, %c0_45, %c0_46] : memref<2x8x32xbf16, #tpu.memory_space<vmem>>, vector<2x8x32xbf16>
    tpu.vector_store %arg7[%c0_44, %c0_45, %c0_46], %145 {strides = array<i32>} : memref<2x8x32xbf16, #tpu.memory_space<vmem>>, vector<2x8x32xbf16>,
    return
  }
  func.func @transform_0(%arg0: i32) -> (i32, i32, i32) {
    %c0_i32 = arith.constant 0 : i32
    %c0_i32_0 = arith.constant 0 : i32
    %c0_i32_1 = arith.constant 0 : i32
    return %arg0, %c0_i32, %c0_i32_0 : i32, i32, i32
  }
  func.func @transform_1(%arg0: i32) -> (i32, i32, i32) {
    %c0_i32 = arith.constant 0 : i32
    %c0_i32_0 = arith.constant 0 : i32
    %c0_i32_1 = arith.constant 0 : i32
    return %arg0, %c0_i32, %c0_i32_0 : i32, i32, i32
  }
  func.func @transform_2(%arg0: i32) -> (i32, i32) {
    %c0_i32 = arith.constant 0 : i32
    %c0_i32_0 = arith.constant 0 : i32
    %c0_i32_1 = arith.constant 0 : i32
    return %c0_i32, %c0_i32_0 : i32, i32
  }
  func.func @transform_3(%arg0: i32) -> (i32, i32) {
    %c0_i32 = arith.constant 0 : i32
    %c0_i32_0 = arith.constant 0 : i32
    %c0_i32_1 = arith.constant 0 : i32
    return %c0_i32, %c0_i32_0 : i32, i32
  }
  func.func @transform_4(%arg0: i32) -> (i32, i32) {
    %c0_i32 = arith.constant 0 : i32
    %c0_i32_0 = arith.constant 0 : i32
    %c0_i32_1 = arith.constant 0 : i32
    return %c0_i32, %c0_i32_0 : i32, i32
  }
  func.func @transform_5(%arg0: i32) -> (i32, i32) {
    %c0_i32 = arith.constant 0 : i32
    %c0_i32_0 = arith.constant 0 : i32
    %c0_i32_1 = arith.constant 0 : i32
    return %c0_i32, %c0_i32_0 : i32, i32
  }
  func.func @transform_6(%arg0: i32) -> (i32, i32, i32) {
    %c0_i32 = arith.constant 0 : i32
    %c0_i32_0 = arith.constant 0 : i32
    %c0_i32_1 = arith.constant 0 : i32
    return %arg0, %c0_i32, %c0_i32_0 : i32, i32, i32
  }
}

</mosaic_0001>

<bundles_post_ra>
// kernel: tpu_custom_call.1
= control target key start
LH: loop header
LB: loop body
LE: loop exit
PB: predicated region body
PF: predicated region fallthrough
CT: control target
= control target key end

     0   :  { %11 = vsyncpa [#allocation3], 0  ;;  %s1164_s0 = inlined_call_operand.hbm [shape: f32[2,8,32], index: 0, kind: input, shape index: {}]   ;;  %s1165_s1 = inlined_call_operand.hbm [shape: f32[2,1,8], index: 1, kind: input, shape index: {}]   ;;  %s1166_s2 = inlined_call_operand.hbm [shape: bf16[32,96], index: 2, kind: input, shape index: {}]   ;;  %s1167_s3 = inlined_call_operand.vmem [shape: f32[1,96], index: 3, kind: input, shape index: {}]   ;;  %s1168_s4 = inlined_call_operand.hbm [shape: bf16[32,32], index: 4, kind: input, shape index: {}]   ;;  %s1169_s5 = inlined_call_operand.vmem [shape: f32[1,32], index: 5, kind: input, shape index: {}]   ;;  %s1170_s6 = inlined_call_operand.hbm [shape: bf16[2,8,32], index: 6, kind: output, shape index: {}]  }
   0x1   :  { %12 = vsyncpa [#allocation6], 0 }
   0x2   :  { %13 = vsyncpa [#allocation9], 0  ;;  %s32_s23 = sshll.u32 %s1165_s1, 4  ;;  %s33_s23 = int_to_ptr.hbm [resolvable:$true] %s32_s23 }
   0x3   :  { %14 = vsyncpa [#allocation4], 0  ;;  %s963_s24 = smov [#allocation5]   ;;  %s19_s28 = sshll.u32 %s1164_s0, 4  ;;  %s20_s28 = int_to_ptr.hbm [resolvable:$true] %s19_s28 }
   0x4   :  { %s34_s25 = sshll.u32 %s963_s24, 4  ;;  %s964_s29 = smov 16   ;;  %s35_s25 = int_to_ptr.vmem [resolvable:$true] %s34_s25 }
   0x5   :  { %s965_s30 = smov 1   ;;  %s966_s7 = smov [#allocation2]  }
   0x6   :  { %40 = dma.hbm_to_vmem [thread:$0]  %s33_s23, 32, %s35_s25, [#allocation6], %s964_s29, %s964_s29, %s965_s30  }
   0x7   :  { %s21_s8 = sshll.u32 %s966_s7, 4  ;;  %s967_s9 = smov 128   ;;  %s22_s8 = int_to_ptr.vmem [resolvable:$true] %s21_s8 }
   0x8   :  { %s968_s10 = smov 8   ;;  %s45_s12 = sshll.u32 %s1166_s2, 4  ;;  %s46_s12 = int_to_ptr.hbm [resolvable:$true] %s45_s12 }
   0x9   :  { %27 = dma.hbm_to_vmem [thread:$0]  %s20_s28, 256, %s22_s8, [#allocation3], %s967_s9, %s967_s9, %s968_s10  }
   0xa   :  { %s969_s13 = smov [#allocation7]   ;;  %s60_s16 = sshll.u32 %s1168_s4, 4  ;;  %s61_s16 = int_to_ptr.hbm [resolvable:$true] %s60_s16 }
   0xb   :  { %s47_s14 = sshll.u32 %s969_s13, 4  ;;  %s970_s17 = smov 64   ;;  %s48_s14 = int_to_ptr.vmem [resolvable:$true] %s47_s14 }
   0xc   :  { %s971_s18 = smov 4   ;;  %s972_s19 = smov [#allocation8]  }
   0xd   :  { %53 = dma.hbm_to_vmem [thread:$0]  %s46_s12, 256, %s48_s14, [#allocation6], %s970_s17, %s970_s17, %s971_s18  }
   0xe   :  { %s62_s20 = sshll.u32 %s972_s19, 4  ;;  %s63_s20 = int_to_ptr.vmem [resolvable:$true] %s62_s20 }
   0xf   :  { %68 = dma.hbm_to_vmem [thread:$0]  %s61_s16, 256, %s63_s20, [#allocation9], %s970_s17, %s970_s17, %s971_s18  }
  0x10   :  { %955 = dma.done.wait [#allocation3], 256  }
  0x11   :  { %956 = vsyncadd [#allocation3], 4294967040 }
  0x12   :  { %957 = dma.done.wait [#allocation6], 288  }
  0x13   :  { %958 = vsyncadd [#allocation6], 4294967008 }
  0x14   :  { %959 = dma.done.wait [#allocation9], 256  }
  0x15   :  { %960 = vsyncadd [#allocation9], 4294967040  ;;  %v777_v0 = vld [vmem:[#allocation7 + $0x8] sm:$0xff]  ;;  %v776_v1 = vld [vmem:[#allocation7] sm:$0xff]  ;;  %vm111_vm0 = vcmask 261120   ;;  %s973_s21 = smov 88   ;;  %v129_v30 = vlaneseq }
  0x16   :  { %121 = vmatpush.bf16.msra.mxu0 %v777_v0  ;;  %v88_v2 = vld [vmem:[#allocation2] sm:$0xff]  ;;  %v89_v3 = vld [vmem:[#allocation2 + $0x8] sm:$0xff]  ;;  %s974_s22 = smov 96   ;;  %s976_s23 = smov 80   ;;  %vm162_vm1 = vcmask 64512   ;;  %v978_v31 = vmov 0  }
  0x17   :  { %v90_v4 = vpack.c.bf16 %v89_v3, %v88_v2  ;;  %v801_v5 = vld [vmem:[%s1167_s3] ss:$0 sm:$0xff]  ;;  %s975_s3 = smov 120   ;;  %s977_s24 = smov 112   ;;  %v134_v29 = vld [vmem:[#allocation5] sm:$0x1] }
  0x18   :  { %vm136_vm2 = vcmp.eq.f32.partialorder %v134_v29, 0.0  ;;  %v130_v33 = vshrl.u32 %v129_v30, 7  ;;  %v132_v34 = vand.u32 127, %v129_v30  ;;  %v135_v36 = vld [vmem:[#allocation5 + $0x1] sm:$0x1]  ;;  %vm239_vm9 = vcmask 1043456  }
  0x19   :  { %v140_v32 = vsel %vm136_vm2, 1, %v978_v31  ;;  %vm137_vm6 = vcmp.eq.f32.partialorder %v135_v36, 0.0  ;;  %v979_v38 = vmov -1e+30   ;;  %s980_s25 = smov 56   ;;  %s981_s26 = smov 72  }
  0x1a   :  { %122 = vmatpush.bf16.msra.mxu0 %v776_v1  ;;  %v142_v35 = vperm.slane %v140_v32, 0  ;;  %vm133_vm3 = vcmp.le.s32.totalorder %v132_v34, %v130_v33  ;;  %v141_v41 = vsel %vm137_vm6, 1, %v978_v31  ;;  %s982_s27 = smov 104   ;;  %s983_s28 = smov 48   ;;  %vm723_vm10 = vcmask 257024  }
  0x1b   :  { %v143_v43 = vperm.slane %v141_v41, 0  ;;  %s984_s29 = smov 40   ;;  %s732_s1 = sshll.u32 %s1170_s6, 4  ;;  %s733_s1 = int_to_ptr.hbm [resolvable:$true] %s732_s1 }
  0x1c   :  { %vm144_vm4 = vcmp.eq.s32.totalorder %v142_v35, 1 }
  0x1d   :  { %755 = vmatmul.msk.bf16.vlgmr.msra.gmra.mxu0 %vm111_vm0, %v90_v4  ;;  %vm146_vm5 = vmand %vm133_vm3, %vm144_vm4  ;;  %vm145_vm7 = vcmp.eq.s32.totalorder %v143_v43, 1  ;;  %v278_v43 = vld [vmem:[#allocation8] sm:$0xf] }
  0x1e   :  { %v1067_v39 = vsel %vm146_vm5, 0.0, %v979_v38  ;;  %vm147_vm8 = vmand %vm133_vm3, %vm145_vm7 }
  0x1f   :  { %v1072_v47 = vsel %vm147_vm8, 0.0, %v979_v38 }
  0x9a   :  { %v124_v6 = vpop.f32.mrf.mxu0 }
  0x9b   :  { %v125_v7 = vadd.f32 %v801_v5, %v124_v6 }
  0x9d   :  { %v155_v8 = vpack.c.bf16 %v125_v7, %v125_v7 }
  0x9f   :  { %v158_v9 = vunpack.c.l.b16 %v155_v8 }
  0xa1   :  { %v1042_v10 = vpack.c.b16 %v158_v9, %v158_v9 }
  0xa2   :  { %v126_v11 = vpop.f32.mrf.mxu0 }
  0xa3   :  { %v127_v12 = vadd.f32 %v801_v5, %v126_v11  ;;  %303 = vrot.lane.b32.xlu1 %v1042_v10, %s973_s21  ;;  %160 = vrot.lane.b32.xlu0 %v1042_v10, %s974_s22 }
  0xa5   :  { %v156_v13 = vpack.c.bf16 %v127_v12, %v127_v12 }
  0xa7   :  { %v183_v14 = vunpack.c.l.b16 %v156_v13 }
  0xa9   :  { %v1046_v15 = vpack.c.b16 %v183_v14, %v183_v14 }
  0xab   :  { %326 = vrot.lane.b32.xlu2 %v1046_v15, %s973_s21  ;;  %301 = vrot.lane.b32.xlu1 %v1042_v10, %s975_s3 }
  0xac   :  { %185 = vrot.lane.b32.xlu0 %v1046_v15, %s974_s22 }
  0xb3   :  { %324 = vrot.lane.b32.xlu2 %v1046_v15, %s975_s3 }
  0xbb   :  { %443 = vrot.lane.b32.xlu2 %v1042_v10, %s976_s23 }
  0xc3   :  { %441 = vrot.lane.b32.xlu2 %v1042_v10, %s977_s24 }
 0x105   :  { %v327_v16 = vpop.permute.xlu2 %326 }
 0x106   :  { %v332_v24 = vsel %vm162_vm1, %v327_v16, 0 }
 0x10d   :  { %v325_v21 = vpop.permute.xlu2 %324 }
 0x115   :  { %v304_v17 = vpop.permute.xlu1 %303  ;;  %v161_v18 = vpop.permute.xlu0 %160 }
 0x116   :  { %v309_v19 = vsel %vm162_vm1, %v304_v17, 0  ;;  %v167_v20 = vsel %vm162_vm1, %v161_v18, 0  ;;  %v444_v25 = vpop.permute.xlu2 %443 }
 0x117   :  { %176 = vmatpush.bf16.xpose.msra.mxu1 %v167_v20  ;;  %v449_v26 = vsel %vm162_vm1, %v444_v25, 0 }
 0x11d   :  { %v302_v27 = vpop.permute.xlu1 %301 }
 0x11e   :  { %v186_v22 = vpop.permute.xlu0 %185  ;;  %756 = vmatmul.msk.bf16.vlgmr.msra.gmra.mxu1 %vm162_vm1, %v155_v8  ;;  %v442_v28 = vpop.permute.xlu2 %441 }
 0x11f   :  { %318 = vmatpush.bf16.xpose.msrb.mxu1 %v309_v19  ;;  %v191_v23 = vsel %vm162_vm1, %v186_v22, 0 }
 0x120   :  { %200 = vmatpush.bf16.xpose.msra.mxu2 %v191_v23 }
 0x127   :  { %757 = vmatmul.msk.bf16.vlgmr.msra.gmra.mxu2 %vm162_vm1, %v156_v13 }
 0x128   :  { %341 = vmatpush.bf16.xpose.msrb.mxu2 %v332_v24 }
 0x12e   :  { %761 = vmatmul.msk.bf16.vlgmr.msrb.gmra.mxu1 %vm162_vm1, %v302_v27 }
 0x130   :  { %458 = vmatpush.bf16.xpose.msra.mxu2 %v449_v26 }
 0x137   :  { %762 = vmatmul.msk.bf16.vlgmr.msrb.gmra.mxu2 %vm162_vm1, %v325_v21 }
 0x147   :  { %766 = vmatmul.msk.bf16.vlgmr.msra.gmra.mxu2 %vm162_vm1, %v442_v28 }
 0x19b   :  { %v178_v37 = vpop.f32.mrf.mxu1 }
 0x19c   :  { %v206_v40 = vmul.f32 0.35355338, %v178_v37 }
 0x19e   :  { %v208_v42 = vadd.f32 %v206_v40, %v1067_v39 }
 0x1a0   :  { %v210_v44 = vsel %vm162_vm1, %v208_v42, -inf }
 0x1a1   :  { %211 = vmax.xlane.f32.xlu0 %v210_v44 }
 0x1a3   :  { %v180_v45 = vpop.f32.mrf.mxu1 }
 0x1a4   :  { %v283_v45 = vsel %vm239_vm9, %v278_v43, 0 }
 0x1a5   :  { %292 = vmatpush.bf16.msrb.mxu0 %v283_v45 }
 0x1aa   :  { %v202_v46 = vpop.f32.mrf.mxu2 }
 0x1ab   :  { %v207_v48 = vmul.f32 0.35355338, %v202_v46  ;;  %v320_v49 = vpop.f32.mrf.mxu1 }
 0x1ac   :  { %v347_v50 = vmul.f32 0.35355338, %v320_v49 }
 0x1ad   :  { %v209_v51 = vadd.f32 %v207_v48, %v1072_v47 }
 0x1ae   :  { %v349_v53 = vadd.f32 %v347_v50, %v1067_v39  ;;  %v418_v50 = vld [vmem:[#allocation8 + $0x4] sm:$0xf] }
 0x1af   :  { %v213_v52 = vsel %vm162_vm1, %v209_v51, -inf }
 0x1b0   :  { %214 = vmax.xlane.f32.xlu1 %v213_v52  ;;  %v351_v54 = vsel %vm162_vm1, %v349_v53, -inf  ;;  %v423_v52 = vsel %vm239_vm9, %v418_v50, 0 }
 0x1b1   :  { %352 = vmax.xlane.f32.xlu0 %v351_v54  ;;  %432 = vmatpush.bf16.msra.mxu1 %v423_v52 }
 0x1b2   :  { %v204_v55 = vpop.f32.mrf.mxu2 }
 0x1b3   :  { %v322_v56 = vpop.f32.mrf.mxu1 }
 0x1ba   :  { %v343_v57 = vpop.f32.mrf.mxu2 }
 0x1bb   :  { %v348_v19 = vmul.f32 0.35355338, %v343_v57 }
 0x1bd   :  { %v350_v20 = vadd.f32 %v348_v19, %v1072_v47 }
 0x1bf   :  { %v354_v21 = vsel %vm162_vm1, %v350_v20, -inf }
 0x1c2   :  { %v345_v58 = vpop.f32.mrf.mxu2 }
 0x1c9   :  { %234 = vrot.lane.b32.xlu1 %v1042_v10, %s970_s17 }
 0x1ca   :  { %v460_v59 = vpop.f32.mrf.mxu2 }
 0x1cb   :  { %v487_v61 = vmul.f32 0.35355338, %v460_v59 }
 0x1cd   :  { %v489_v62 = vadd.f32 %v487_v61, %v1067_v39 }
 0x1cf   :  { %v491_v63 = vsel %vm162_vm1, %v489_v62, -inf }
 0x1d1   :  { %466 = vrot.lane.b32.xlu1 %v1046_v15, %s976_s23 }
 0x1d2   :  { %v462_v60 = vpop.f32.mrf.mxu2 }
 0x1d9   :  { %464 = vrot.lane.b32.xlu1 %v1046_v15, %s977_s24 }
 0x203   :  { %492 = vmax.xlane.f32.xlu1 %v491_v63 }
 0x214   :  { %v212_v0 = vpop.xlane.xlu0 %211 }
 0x215   :  { %v216_v1 = vsub.f32 %v208_v42, %v212_v0 }
 0x217   :  { %v218_v2 = vmul.f32 1.442695, %v216_v1 }
 0x219   :  { %803 = vpow2.f32 %v218_v2 }
 0x21f   :  { %v804_v3 = vpop.eup %803 }
 0x220   :  { %v222_v4 = vsel %vm162_vm1, %v804_v3, 0.0 }
 0x221   :  { %223 = vadd.xlane.f32.xlu2 %v222_v4 }
 0x223   :  { %v215_v5 = vpop.xlane.xlu1 %214 }
 0x224   :  { %v217_v6 = vsub.f32 %v209_v51, %v215_v5  ;;  %v353_v7 = vpop.xlane.xlu0 %352 }
 0x225   :  { %v357_v9 = vsub.f32 %v349_v53, %v353_v7 }
 0x226   :  { %v220_v8 = vmul.f32 1.442695, %v217_v6 }
 0x227   :  { %v359_v11 = vmul.f32 1.442695, %v357_v9 }
 0x228   :  { %805 = vpow2.f32 %v220_v8 }
 0x229   :  { %807 = vpow2.f32 %v359_v11 }
 0x22e   :  { %v806_v12 = vpop.eup %805 }
 0x22f   :  { %v225_v13 = vsel %vm162_vm1, %v806_v12, 0.0  ;;  %v808_v14 = vpop.eup %807 }
 0x230   :  { %226 = vadd.xlane.f32.xlu0 %v225_v13  ;;  %v363_v16 = vsel %vm162_vm1, %v808_v14, 0.0 }
 0x238   :  { %364 = vadd.xlane.f32.xlu0 %v363_v16 }
 0x239   :  { %256 = vrot.lane.b32.xlu2 %v1046_v15, %s970_s17 }
 0x23b   :  { %v235_v17 = vpop.permute.xlu1 %234 }
 0x23c   :  { %v241_v18 = vsel %vm239_vm9, %v235_v17, 0 }
 0x23d   :  { %250 = vmatpush.bf16.msra.mxu3 %v241_v18 }
 0x243   :  { %v467_v22 = vpop.permute.xlu1 %466 }
 0x244   :  { %v472_v48 = vsel %vm162_vm1, %v467_v22, 0 }
 0x24b   :  { %v465_v23 = vpop.permute.xlu1 %464 }
 0x24c   :  { %375 = vrot.lane.b32.xlu0 %v1042_v10, %s980_s25 }
 0x262   :  { %355 = vmax.xlane.f32.xlu2 %v354_v21 }
 0x276   :  { %v493_v24 = vpop.xlane.xlu1 %492 }
 0x277   :  { %v497_v25 = vsub.f32 %v489_v62, %v493_v24 }
 0x279   :  { %v499_v26 = vmul.f32 1.442695, %v497_v25 }
 0x27a   :  { %396 = vrot.lane.b32.xlu2 %v1046_v15, %s980_s25 }
 0x27b   :  { %809 = vpow2.f32 %v499_v26 }
 0x281   :  { %v1096_v27 = vpop.eup %809 }
 0x282   :  { %v503_v28 = vsel %vm162_vm1, %v1096_v27, 0.0  ;;  %606 = vrot.lane.b32.xlu2 %v1046_v15, %s981_s26 }
 0x283   :  { %504 = vadd.xlane.f32.xlu1 %v503_v28 }
 0x28a   :  { %604 = vrot.lane.b32.xlu2 %v1046_v15, %s982_s27 }
 0x292   :  { %536 = vrot.lane.b32.xlu2 %v1046_v15, %s983_s28 }
 0x294   :  { %v224_v29 = vpop.xlane.xlu2 %223 }
 0x295   :  { %811 = vrcp.f32 %v224_v29 }
 0x29b   :  { %v812_v30 = vpop.eup %811 }
 0x29c   :  { %583 = vrot.lane.b32.xlu1 %v1042_v10, %s981_s26  ;;  %v257_v31 = vpop.permute.xlu2 %256  ;;  %v230_v32 = vmul.f32 %v812_v30, %v804_v3 }
 0x29d   :  { %v262_v33 = vsel %vm239_vm9, %v257_v31, 0 }
 0x29e   :  { %271 = vmatpush.bf16.msrb.mxu3 %v262_v33  ;;  %v232_v34 = vpack.c.bf16 %v230_v32, %v230_v32 }
 0x2a0   :  { %758 = vmatmul.msk.bf16.vlgmr.msra.gmra.mxu3 %vm162_vm1, %v232_v34 }
 0x2a3   :  { %v227_v35 = vpop.xlane.xlu0 %226 }
 0x2a4   :  { %813 = vrcp.f32 %v227_v35 }
 0x2aa   :  { %v814_v36 = vpop.eup %813 }
 0x2ab   :  { %v231_v37 = vmul.f32 %v814_v36, %v806_v12  ;;  %v365_v40 = vpop.xlane.xlu0 %364 }
 0x2ac   :  { %815 = vrcp.f32 %v365_v40 }
 0x2ad   :  { %v233_v38 = vpack.c.bf16 %v231_v37, %v231_v37 }
 0x2b0   :  { %759 = vmatmul.msk.bf16.vlgmr.msrb.gmra.mxu3 %vm162_vm1, %v233_v38 }
 0x2b2   :  { %v816_v41 = vpop.eup %815 }
 0x2b3   :  { %v371_v42 = vmul.f32 %v816_v41, %v808_v14 }
 0x2b5   :  { %v373_v49 = vpack.c.bf16 %v371_v42, %v371_v42 }
 0x2be   :  { %v376_v44 = vpop.permute.xlu0 %375 }
 0x2bf   :  { %v381_v46 = vsel %vm239_vm9, %v376_v44, 0 }
 0x2c0   :  { %390 = vmatpush.bf16.msra.mxu3 %v381_v46 }
 0x2c3   :  { %763 = vmatmul.msk.bf16.vlgmr.msra.gmra.mxu3 %vm162_vm1, %v373_v49 }
 0x2c4   :  { %481 = vmatpush.bf16.xpose.msrb.mxu3 %v472_v48 }
 0x2d3   :  { %767 = vmatmul.msk.bf16.vlgmr.msrb.gmra.mxu3 %vm162_vm1, %v465_v23 }
 0x2d5   :  { %v356_v51 = vpop.xlane.xlu2 %355 }
 0x2d6   :  { %v358_v53 = vsub.f32 %v350_v20, %v356_v51 }
 0x2d8   :  { %v361_v54 = vmul.f32 1.442695, %v358_v53 }
 0x2da   :  { %817 = vpow2.f32 %v361_v54  ;;  %v802_v54 = vld [vmem:[%s1169_s5] ss:$0 sm:$0xff]  ;;  %s985_s5 = smov [#allocation10]  }
 0x2db   :  { %s730_s8 = sshll.u32 %s985_s5, 4  ;;  %s731_s8 = int_to_ptr.vmem [resolvable:$true] %s730_s8 }
 0x2dd   :  { %v397_v55 = vpop.permute.xlu2 %396 }
 0x2de   :  { %v402_v56 = vsel %vm239_vm9, %v397_v55, 0 }
 0x2df   :  { %411 = vmatpush.bf16.msra.mxu0 %v402_v56 }
 0x2e0   :  { %v818_v57 = vpop.eup %817 }
 0x2e1   :  { %v366_v58 = vsel %vm162_vm1, %v818_v57, 0.0 }
 0x2e2   :  { %367 = vadd.xlane.f32.xlu0 %v366_v58 }
 0x2e5   :  { %v607_v59 = vpop.permute.xlu2 %606 }
 0x2e6   :  { %v612_v23 = vsel %vm162_vm1, %v607_v59, 0 }
 0x2ed   :  { %v605_v60 = vpop.permute.xlu2 %604 }
 0x2f5   :  { %v537_v61 = vpop.permute.xlu2 %536 }
 0x2f6   :  { %v542_v62 = vsel %vm239_vm9, %v537_v61, 0  ;;  %515 = vrot.lane.b32.xlu0 %v1042_v10, %s983_s28  ;;  %v505_v63 = vpop.xlane.xlu1 %504 }
 0x2f7   :  { %551 = vmatpush.bf16.msrb.mxu1 %v542_v62 }
 0x2fe   :  { %581 = vrot.lane.b32.xlu0 %v1042_v10, %s982_s27 }
 0x30e   :  { %v584_v0 = vpop.permute.xlu1 %583 }
 0x30f   :  { %v589_v1 = vsel %vm162_vm1, %v584_v0, 0 }
 0x310   :  { %598 = vmatpush.bf16.xpose.msra.mxu3 %v589_v1 }
 0x323   :  { %v252_v2 = vpop.f32.mrf.mxu3 }
 0x32b   :  { %v254_v3 = vpop.f32.mrf.mxu3 }
 0x333   :  { %v273_v4 = vpop.f32.mrf.mxu3 }
 0x334   :  { %v277_v5 = vpack.c.bf16 %v273_v4, %v252_v2  ;;  %v558_v4 = vld [vmem:[#allocation8 + $0x8] sm:$0xf] }
 0x336   :  { %760 = vmatmul.msk.bf16.vlgmr.msrb.gmra.mxu0 %vm162_vm1, %v277_v5  ;;  %v563_v5 = vsel %vm239_vm9, %v558_v4, 0 }
 0x337   :  { %572 = vmatpush.bf16.msrb.mxu2 %v563_v5 }
 0x33b   :  { %v275_v6 = vpop.f32.mrf.mxu3 }
 0x346   :  { %v392_v7 = vpop.f32.mrf.mxu3 }
 0x34e   :  { %v394_v8 = vpop.f32.mrf.mxu3 }
 0x355   :  { %v368_v11 = vpop.xlane.xlu0 %367 }
 0x356   :  { %v483_v9 = vpop.f32.mrf.mxu3  ;;  %819 = vrcp.f32 %v368_v11 }
 0x357   :  { %v488_v12 = vmul.f32 0.35355338, %v483_v9  ;;  %821 = vrcp.f32 %v505_v63 }
 0x359   :  { %v490_v13 = vadd.f32 %v488_v12, %v1072_v47 }
 0x35b   :  { %v494_v14 = vsel %vm162_vm1, %v490_v13, -inf }
 0x35c   :  { %495 = vmax.xlane.f32.xlu0 %v494_v14  ;;  %v820_v16 = vpop.eup %819 }
 0x35d   :  { %v372_v17 = vmul.f32 %v820_v16, %v818_v57  ;;  %v822_v20 = vpop.eup %821 }
 0x35e   :  { %v485_v18 = vpop.f32.mrf.mxu3  ;;  %v511_v24 = vmul.f32 %v822_v20, %v1096_v27 }
 0x35f   :  { %v374_v19 = vpack.c.bf16 %v372_v17, %v372_v17 }
 0x360   :  { %v513_v25 = vpack.c.bf16 %v511_v24, %v511_v24 }
 0x361   :  { %764 = vmatmul.msk.bf16.vlgmr.msra.gmra.mxu0 %vm162_vm1, %v374_v19 }
 0x368   :  { %v516_v21 = vpop.permute.xlu0 %515 }
 0x369   :  { %v521_v22 = vsel %vm239_vm9, %v516_v21, 0 }
 0x36a   :  { %530 = vmatpush.bf16.msrb.mxu0 %v521_v22 }
 0x36e   :  { %621 = vmatpush.bf16.xpose.msra.mxu0 %v612_v23 }
 0x370   :  { %v582_v26 = vpop.permute.xlu0 %581 }
 0x371   :  { %768 = vmatmul.msk.bf16.vlgmr.msrb.gmra.mxu0 %vm162_vm1, %v513_v25  ;;  %771 = vmatmul.msk.bf16.vlgmr.msra.gmra.mxu3 %vm162_vm1, %v582_v26 }
 0x381   :  { %772 = vmatmul.msk.bf16.vlgmr.msra.gmra.mxu0 %vm162_vm1, %v605_v60 }
 0x3b3   :  { %v294_v28 = vpop.f32.mrf.mxu0 }
 0x3b4   :  { %v299_v55 = vadd.f32 %v802_v54, %v294_v28  ;;  %v698_v28 = vld [vmem:[#allocation8 + $0xc] sm:$0xf] }
 0x3bb   :  { %v1133_v32 = vpop.f32.mrf.mxu0 }
 0x3bc   :  { %v300_v23 = vadd.f32 %v802_v54, %v1133_v32 }
 0x3cf   :  { %v496_v29 = vpop.xlane.xlu0 %495 }
 0x3d0   :  { %v498_v30 = vsub.f32 %v490_v13, %v496_v29 }
 0x3d2   :  { %v501_v31 = vmul.f32 1.442695, %v498_v30  ;;  %v703_v30 = vsel %vm239_vm9, %v698_v28, 0 }
 0x3d3   :  { %712 = vmatpush.bf16.msrb.mxu3 %v703_v30 }
 0x3d4   :  { %823 = vpow2.f32 %v501_v31 }
 0x3da   :  { %v824_v33 = vpop.eup %823 }
 0x3db   :  { %v506_v34 = vsel %vm162_vm1, %v824_v33, 0.0 }
 0x3dc   :  { %507 = vadd.xlane.f32.xlu1 %v506_v34 }
 0x3de   :  { %v413_v27 = vpop.f32.mrf.mxu0 }
 0x3df   :  { %v417_v35 = vpack.c.bf16 %v413_v27, %v392_v7 }
 0x3e1   :  { %765 = vmatmul.msk.bf16.vlgmr.msra.gmra.mxu1 %vm162_vm1, %v417_v35 }
 0x3e6   :  { %v415_v36 = vpop.f32.mrf.mxu0 }
 0x3ee   :  { %v532_v37 = vpop.f32.mrf.mxu0 }
 0x3f4   :  { %v600_v38 = vpop.f32.mrf.mxu3 }
 0x3f5   :  { %v627_v40 = vmul.f32 0.35355338, %v600_v38 }
 0x3f6   :  { %v534_v41 = vpop.f32.mrf.mxu0 }
 0x3f7   :  { %v629_v42 = vadd.f32 %v627_v40, %v1067_v39 }
 0x3f9   :  { %v631_v43 = vsel %vm162_vm1, %v629_v42, -inf }
 0x3fa   :  { %632 = vmax.xlane.f32.xlu0 %v631_v43 }
 0x3fc   :  { %v602_v44 = vpop.f32.mrf.mxu3 }
 0x3fe   :  { %v623_v45 = vpop.f32.mrf.mxu0 }
 0x3ff   :  { %v628_v46 = vmul.f32 0.35355338, %v623_v45 }
 0x401   :  { %v630_v48 = vadd.f32 %v628_v46, %v1072_v47 }
 0x403   :  { %v634_v49 = vsel %vm162_vm1, %v630_v48, -inf }
 0x404   :  { %635 = vmax.xlane.f32.xlu2 %v634_v49 }
 0x406   :  { %v625_v50 = vpop.f32.mrf.mxu0 }
 0x41c   :  { %655 = vrot.lane.b32.xlu2 %v1042_v10, %s984_s29 }
 0x44f   :  { %v508_v51 = vpop.xlane.xlu1 %507 }
 0x450   :  { %825 = vrcp.f32 %v508_v51 }
 0x456   :  { %v826_v52 = vpop.eup %825 }
 0x457   :  { %v512_v53 = vmul.f32 %v826_v52, %v824_v33 }
 0x459   :  { %v514_v39 = vpack.c.bf16 %v512_v53, %v512_v53 }
 0x45b   :  { %769 = vmatmul.msk.bf16.vlgmr.msrb.gmra.mxu1 %vm162_vm1, %v514_v39 }
 0x45e   :  { %v434_v47 = vpop.f32.mrf.mxu1 }
 0x45f   :  { %v439_v56 = vadd.f32 %v434_v47, %v299_v55 }
 0x466   :  { %v436_v6 = vpop.f32.mrf.mxu1 }
 0x467   :  { %v440_v24 = vadd.f32 %v436_v6, %v300_v23 }
 0x46d   :  { %v633_v57 = vpop.xlane.xlu0 %632 }
 0x46e   :  { %v637_v58 = vsub.f32 %v629_v42, %v633_v57 }
 0x470   :  { %v639_v59 = vmul.f32 1.442695, %v637_v58 }
 0x472   :  { %827 = vpow2.f32 %v639_v59 }
 0x477   :  { %v636_v60 = vpop.xlane.xlu2 %635 }
 0x478   :  { %v828_v10 = vpop.eup %827  ;;  %v638_v61 = vsub.f32 %v630_v48, %v636_v60 }
 0x479   :  { %v643_v62 = vsel %vm162_vm1, %v828_v10, 0.0 }
 0x47a   :  { %v641_v63 = vmul.f32 1.442695, %v638_v61  ;;  %644 = vadd.xlane.f32.xlu0 %v643_v62 }
 0x47c   :  { %829 = vpow2.f32 %v641_v63 }
 0x47f   :  { %v656_v0 = vpop.permute.xlu2 %655 }
 0x480   :  { %v661_v1 = vsel %vm239_vm9, %v656_v0, 0 }
 0x481   :  { %670 = vmatpush.bf16.msra.mxu1 %v661_v1 }
 0x482   :  { %v830_v2 = vpop.eup %829 }
 0x483   :  { %v646_v3 = vsel %vm162_vm1, %v830_v2, 0.0 }
 0x484   :  { %647 = vadd.xlane.f32.xlu1 %v646_v3 }
 0x49d   :  { %676 = vrot.lane.b32.xlu1 %v1046_v15, %s984_s29 }
 0x4d8   :  { %v553_v7 = vpop.f32.mrf.mxu1 }
 0x4d9   :  { %v557_v8 = vpack.c.bf16 %v553_v7, %v532_v37 }
 0x4db   :  { %770 = vmatmul.msk.bf16.vlgmr.msrb.gmra.mxu2 %vm162_vm1, %v557_v8 }
 0x4e0   :  { %v555_v9 = vpop.f32.mrf.mxu1 }
 0x4ed   :  { %v645_v11 = vpop.xlane.xlu0 %644 }
 0x4ee   :  { %831 = vrcp.f32 %v645_v11 }
 0x4f4   :  { %v832_v12 = vpop.eup %831 }
 0x4f5   :  { %v651_v13 = vmul.f32 %v832_v12, %v828_v10 }
 0x4f7   :  { %v653_v14 = vpack.c.bf16 %v651_v13, %v651_v13  ;;  %v648_v16 = vpop.xlane.xlu1 %647 }
 0x4f8   :  { %833 = vrcp.f32 %v648_v16 }
 0x4f9   :  { %773 = vmatmul.msk.bf16.vlgmr.msra.gmra.mxu1 %vm162_vm1, %v653_v14 }
 0x4fe   :  { %v834_v15 = vpop.eup %833 }
 0x4ff   :  { %v652_v17 = vmul.f32 %v834_v15, %v830_v2 }
 0x501   :  { %v654_v20 = vpack.c.bf16 %v652_v17, %v652_v17 }
 0x50f   :  { %v677_v18 = vpop.permute.xlu1 %676 }
 0x510   :  { %v682_v19 = vsel %vm239_vm9, %v677_v18, 0 }
 0x511   :  { %691 = vmatpush.bf16.msra.mxu2 %v682_v19 }
 0x514   :  { %774 = vmatmul.msk.bf16.vlgmr.msra.gmra.mxu2 %vm162_vm1, %v654_v20 }
 0x55e   :  { %v574_v21 = vpop.f32.mrf.mxu2 }
 0x55f   :  { %v579_v22 = vadd.f32 %v574_v21, %v439_v56 }
 0x566   :  { %v576_v25 = vpop.f32.mrf.mxu2 }
 0x567   :  { %v580_v26 = vadd.f32 %v576_v25, %v440_v24 }
 0x576   :  { %v672_v29 = vpop.f32.mrf.mxu1 }
 0x57e   :  { %v674_v31 = vpop.f32.mrf.mxu1 }
 0x597   :  { %v693_v33 = vpop.f32.mrf.mxu2 }
 0x598   :  { %v697_v34 = vpack.c.bf16 %v693_v33, %v672_v29 }
 0x59a   :  { %775 = vmatmul.msk.bf16.vlgmr.msrb.gmra.mxu3 %vm162_vm1, %v697_v34 }
 0x59f   :  { %v695_v27 = vpop.f32.mrf.mxu2 }
 0x61d   :  { %v714_v35 = vpop.f32.mrf.mxu3 }
 0x61e   :  { %v719_v36 = vadd.f32 %v714_v35, %v579_v22 }
 0x620   :  { %v721_v37 = vpack.c.bf16 %v719_v36, %v719_v36 }
 0x622   :  { %724 = vst.msk [vmem:[#allocation10] sm:$0xf] %vm723_vm10, %v721_v37 }
 0x625   :  { %v716_v32 = vpop.f32.mrf.mxu3 }
 0x626   :  { %v720_v38 = vadd.f32 %v716_v32, %v580_v26 }
 0x628   :  { %v722_v40 = vpack.c.bf16 %v720_v38, %v720_v38 }
 0x62a   :  { %725 = vst.msk [vmem:[#allocation10 + $0x4] sm:$0xf] %vm723_vm10, %v722_v40 }
 0x62b   :  { %738 = dma.vmem_to_hbm [thread:$0]  %s731_s8, 128, %s733_s1, [#allocation4], %s970_s17, %s970_s17, %s971_s18  }
 0x62c   :  { %961 = dma.done.wait [#allocation4], 128  }
 0x62d   :  { %962 = vsyncadd [#allocation4], 4294967168 }
 0x62e   :  { %743 = vsyncpa [#allocation3], 1 }
 0x62f   :  { %744 = vsyncpa [#allocation6], 1 }
 0x630   :  { %745 = vsyncpa [#allocation9], 1 }
 0x631   :  { %746 = vsyncpa [#allocation4], 1 }

</bundles_post_ra>
